<compile_context>
chip_gen: v6e
topology: v6e:2x2x1
jax: 0.10.0
libtpu: 0.0.40
codegen_flags: <defaults>
</compile_context>

<pallas_src>
import functools

import jax
import jax.numpy as jnp
from jax.experimental import pallas as pl
from jax.experimental.pallas import tpu as pltpu


def _round_up(v, m):
    return (v + m - 1) // m * m


def linear_kernel(x_ref, wt_ref, b_ref, o_ref, acc_ref):
    # x_ref: (tm, tk), wt_ref: (tk, tn), b_ref: (1, tn), o_ref: (tm, tn)
    # acc_ref: (tm, tn) f32 scratch, resident across the k (reduction) axis.
    k = pl.program_id(2)

    @pl.when(k == 0)
    def _init():
        acc_ref[...] = jnp.zeros_like(acc_ref)

    acc_ref[...] += jnp.dot(
        x_ref[...], wt_ref[...], preferred_element_type=jnp.float32
    )

    @pl.when(k == pl.num_programs(2) - 1)
    def _finalize():
        # Bias add only once per (i, j) tile; single store to o_ref.
        out = acc_ref[...] + b_ref[...].astype(jnp.float32)
        o_ref[...] = out.astype(o_ref.dtype)


@functools.partial(jax.jit, static_argnames=("tm", "tn", "tk"))
def linear_pallas(x, weight, bias, *, tm=128, tn=256, tk=256):
    """y = x @ weight.T + bias, tiled Pallas TPU kernel."""
    M, K = x.shape
    N, K2 = weight.shape
    assert K == K2, "in_features mismatch"
    assert bias.shape == (N,)

    # One-time layout plumbing in the wrapper (outside the hot loop):
    # contraction dim K becomes the leading dim of the weight, OUT is the
    # lane dim of both the weight tile and the output tile.
    wt = weight.T  # (K, N)

    # Pad to tile multiples so every block is full-size, MXU/lane aligned.
    Mp, Kp, Np = _round_up(M, tm), _round_up(K, tk), _round_up(N, tn)
    if (Mp, Kp) != (M, K):
        x = jnp.pad(x, ((0, Mp - M), (0, Kp - K)))
    if (Kp, Np) != (K, N):
        wt = jnp.pad(wt, ((0, Kp - K), (0, Np - N)))
    b2d = jnp.pad(bias, (0, Np - N)).reshape(1, Np)

    grid = (Mp // tm, Np // tn, Kp // tk)

    out_dtype = x.dtype
    itemsize = jnp.dtype(out_dtype).itemsize
    cost = pl.CostEstimate(
        flops=2 * Mp * Np * Kp,
        transcendentals=0,
        bytes_accessed=(Mp * Kp + Kp * Np + Np + Mp * Np) * itemsize,
    )

    out = pl.pallas_call(
        linear_kernel,
        out_shape=jax.ShapeDtypeStruct((Mp, Np), out_dtype),
        grid_spec=pltpu.PrefetchScalarGridSpec(
            num_scalar_prefetch=0,
            grid=grid,
            in_specs=[
                pl.BlockSpec((tm, tk), lambda i, j, k: (i, k)),
                pl.BlockSpec((tk, tn), lambda i, j, k: (k, j)),
                pl.BlockSpec((1, tn), lambda i, j, k: (0, j)),
            ],
            out_specs=pl.BlockSpec((tm, tn), lambda i, j, k: (i, j)),
            scratch_shapes=[pltpu.VMEM((tm, tn), jnp.float32)],
        ),
        compiler_params=pltpu.CompilerParams(
            dimension_semantics=("parallel", "parallel", "arbitrary"),
        ),
        cost_estimate=cost,
    )(x, wt, b2d)

    return out[:M, :N]


if __name__ == "__main__":
    key = jax.random.PRNGKey(0)

    # --- Small shapes consistent with the module: batch=8, in=32, out=16 ---
    B, IN, OUT = 8, 32, 16
    kx, kw, kb = jax.random.split(key, 3)
    x = jax.random.normal(kx, (B, IN), dtype=jnp.float32)
    bound = 1.0 / (IN ** 0.5)
    weight = jax.random.uniform(kw, (OUT, IN), minval=-bound, maxval=bound,
                                dtype=jnp.float32)
    bias = jax.random.uniform(kb, (OUT,), minval=-bound, maxval=bound,
                              dtype=jnp.float32)

    out = jax.block_until_ready(linear_pallas(x, weight, bias))
    ref = x @ weight.T + bias
    assert out.shape == (B, OUT)
    assert jnp.allclose(out, ref, atol=2e-4, rtol=2e-4), "small-shape mismatch"

    # --- Larger multi-tile case to exercise the (i, j, k) pipeline ---
    B2, IN2, OUT2 = 320, 640, 384
    k2x, k2w, k2b = jax.random.split(jax.random.PRNGKey(1), 3)
    x2 = jax.random.normal(k2x, (B2, IN2), dtype=jnp.float32)
    bound2 = 1.0 / (IN2 ** 0.5)
    w2 = jax.random.uniform(k2w, (OUT2, IN2), minval=-bound2, maxval=bound2,
                            dtype=jnp.float32)
    b2 = jax.random.uniform(k2b, (OUT2,), minval=-bound2, maxval=bound2,
                            dtype=jnp.float32)

    out2 = jax.block_until_ready(linear_pallas(x2, w2, b2))
    ref2 = x2 @ w2.T + b2
    assert out2.shape == (B2, OUT2)
    assert jnp.allclose(out2, ref2, atol=2e-3, rtol=2e-3), "tiled-shape mismatch"

    print("KERNEL_OK")
</pallas_src>

<mosaic_0001>
module attributes {stable_mosaic.version = 11 : i64} {
  func.func @linear_kernel(%arg0: i32, %arg1: i32, %arg2: i32, %arg3: memref<128x256xf32, #tpu.memory_space<vmem>>, %arg4: memref<256x256xf32, #tpu.memory_space<vmem>>, %arg5: memref<1x256xf32, #tpu.memory_space<vmem>>, %arg6: memref<128x256xf32, #tpu.memory_space<vmem>>, %arg7: memref<128x256xf32, #tpu.memory_space<vmem>>) attributes {dimension_semantics = [#tpu.dimension_semantics<parallel>, #tpu.dimension_semantics<parallel>, #tpu.dimension_semantics<arbitrary>], iteration_bounds = array<i64: 1, 1, 1>, scalar_prefetch = 0 : i64, scratch_operands = 1 : i64, tpu.core_type = #tpu.core_type<tc>, window_params = [{transform_indices = @transform_0, window_bounds = array<i64: 128, 256>}, {transform_indices = @transform_1, window_bounds = array<i64: 256, 256>}, {transform_indices = @transform_2, window_bounds = array<i64: 1, 256>}, {transform_indices = @transform_3, window_bounds = array<i64: 128, 256>}]} {
    %c0_i32 = arith.constant 0 : i32
    %0 = arith.cmpi eq, %arg2, %c0_i32 : i32
    %1 = arith.extui %0 : i1 to i32
    %c0_i32_0 = arith.constant 0 : i32
    %2 = arith.cmpi ne, %1, %c0_i32_0 : i32
    scf.if %2 {
      %cst_10 = arith.constant 0.000000e+00 : f32
      %12 = vector.broadcast %cst_10 : f32 to vector<128x256xf32>
      %c0_11 = arith.constant 0 : index
      %c0_12 = arith.constant 0 : index
      %13 = vector.load %arg7[%c0_11, %c0_12] : memref<128x256xf32, #tpu.memory_space<vmem>>, vector<128x256xf32>
      tpu.vector_store %arg7[%c0_11, %c0_12], %12 {strides = array<i32>} : memref<128x256xf32, #tpu.memory_space<vmem>>, vector<128x256xf32>,
    } else {
    }
    %c0 = arith.constant 0 : index
    %c0_1 = arith.constant 0 : index
    %3 = vector.load %arg7[%c0, %c0_1] : memref<128x256xf32, #tpu.memory_space<vmem>>, vector<128x256xf32>
    %c0_2 = arith.constant 0 : index
    %c0_3 = arith.constant 0 : index
    %4 = vector.load %arg3[%c0_2, %c0_3] : memref<128x256xf32, #tpu.memory_space<vmem>>, vector<128x256xf32>
    %c0_4 = arith.constant 0 : index
    %c0_5 = arith.constant 0 : index
    %5 = vector.load %arg4[%c0_4, %c0_5] : memref<256x256xf32, #tpu.memory_space<vmem>>, vector<256x256xf32>
    %cst = arith.constant dense<0.000000e+00> : vector<128x256xf32>
    %6 = tpu.matmul %4, %5, %cst {dimension_numbers = #tpu.dot_dimension_numbers<[1], [0], [0], [1], [0, 0, 1, 1], [], []>} : vector<128x256xf32>, vector<256x256xf32>, vector<128x256xf32> -> vector<128x256xf32>
    %7 = arith.addf %3, %6 : vector<128x256xf32>
    %c0_6 = arith.constant 0 : index
    %c0_7 = arith.constant 0 : index
    %8 = vector.load %arg7[%c0_6, %c0_7] : memref<128x256xf32, #tpu.memory_space<vmem>>, vector<128x256xf32>
    tpu.vector_store %arg7[%c0_6, %c0_7], %7 {strides = array<i32>} : memref<128x256xf32, #tpu.memory_space<vmem>>, vector<128x256xf32>,
    %c0_i32_8 = arith.constant 0 : i32
    %9 = arith.cmpi eq, %arg2, %c0_i32_8 : i32
    %10 = arith.extui %9 : i1 to i32
    %c0_i32_9 = arith.constant 0 : i32
    %11 = arith.cmpi ne, %10, %c0_i32_9 : i32
    scf.if %11 {
      %c0_10 = arith.constant 0 : index
      %c0_11 = arith.constant 0 : index
      %12 = vector.load %arg7[%c0_10, %c0_11] : memref<128x256xf32, #tpu.memory_space<vmem>>, vector<128x256xf32>
      %c0_12 = arith.constant 0 : index
      %c0_13 = arith.constant 0 : index
      %13 = vector.load %arg5[%c0_12, %c0_13] : memref<1x256xf32, #tpu.memory_space<vmem>>, vector<1x256xf32>
      %14 = vector.broadcast %13 : vector<1x256xf32> to vector<128x256xf32>
      %15 = arith.addf %12, %14 : vector<128x256xf32>
      %c0_14 = arith.constant 0 : index
      %c0_15 = arith.constant 0 : index
      %16 = vector.load %arg6[%c0_14, %c0_15] : memref<128x256xf32, #tpu.memory_space<vmem>>, vector<128x256xf32>
      tpu.vector_store %arg6[%c0_14, %c0_15], %15 {strides = array<i32>} : memref<128x256xf32, #tpu.memory_space<vmem>>, vector<128x256xf32>,
    } else {
    }
    return
  }
  func.func @transform_0(%arg0: i32, %arg1: i32, %arg2: i32) -> (i32, i32) {
    %c0_i32 = arith.constant 0 : i32
    return %arg0, %arg2 : i32, i32
  }
  func.func @transform_1(%arg0: i32, %arg1: i32, %arg2: i32) -> (i32, i32) {
    %c0_i32 = arith.constant 0 : i32
    return %arg2, %arg1 : i32, i32
  }
  func.func @transform_2(%arg0: i32, %arg1: i32, %arg2: i32) -> (i32, i32) {
    %c0_i32 = arith.constant 0 : i32
    %c0_i32_0 = arith.constant 0 : i32
    return %c0_i32, %arg1 : i32, i32
  }
  func.func @transform_3(%arg0: i32, %arg1: i32, %arg2: i32) -> (i32, i32) {
    %c0_i32 = arith.constant 0 : i32
    return %arg0, %arg1 : i32, i32
  }
}

</mosaic_0001>

<bundles_post_ra>
// kernel: linear_pallas.1
= control target key start
LH: loop header
LB: loop body
LE: loop exit
PB: predicated region body
PF: predicated region fallthrough
CT: control target
= control target key end

     0   :  { %s1025_s1 = inlined_call_operand.vmem [shape: f32[256,256], index: 1, kind: input, shape index: {}]   ;;  %s1026_s0 = inlined_call_operand.vmem [shape: f32[128,256], index: 0, kind: input, shape index: {}]   ;;  %s1027_s2 = inlined_call_operand.vmem [shape: f32[1,256], index: 2, kind: input, shape index: {}]   ;;  %s1028_s3 = inlined_call_operand.vmem [shape: f32[128,256], index: 3, kind: output, shape index: {}]  }
   0x1   :  { %v145_v0 = vld [vmem:[%s1025_s1 + $0xf8] sm:$0xff]  ;;  %v144_v1 = vld [vmem:[%s1025_s1 + $0xf0] sm:$0xff]  ;;  %v143_v2 = vld [vmem:[%s1025_s1 + $0xe8] sm:$0xff] }
   0x2   :  { %178 = vmatprep.subr.mxu0 %v145_v0  ;;  %518 = vmatprep.subr.mxu1 %v145_v0  ;;  %v142_v3 = vld [vmem:[%s1025_s1 + $0xe0] sm:$0xff]  ;;  %v141_v4 = vld [vmem:[%s1025_s1 + $0xd8] sm:$0xff]  ;;  %v140_v5 = vld [vmem:[%s1025_s1 + $0xd0] sm:$0xff] }
   0x3   :  { %179 = vmatpush1.msra.mxu0 %v144_v1  ;;  %550 = vmatpush1.msra.mxu1 %v144_v1  ;;  %v139_v6 = vld [vmem:[%s1025_s1 + $0xc8] sm:$0xff]  ;;  %v138_v7 = vld [vmem:[%s1025_s1 + $0xc0] sm:$0xff]  ;;  %v137_v8 = vld [vmem:[%s1025_s1 + $0xb8] sm:$0xff] }
   0x4   :  { %180 = vmatprep.subr.mxu0 %v143_v2  ;;  %519 = vmatprep.subr.mxu1 %v143_v2  ;;  %v136_v9 = vld [vmem:[%s1025_s1 + $0xb0] sm:$0xff]  ;;  %v135_v10 = vld [vmem:[%s1025_s1 + $0xa8] sm:$0xff]  ;;  %v134_v11 = vld [vmem:[%s1025_s1 + $0xa0] sm:$0xff] }
   0x5   :  { %181 = vmatpush1.msra.mxu0 %v142_v3  ;;  %551 = vmatpush1.msra.mxu1 %v142_v3  ;;  %v133_v12 = vld [vmem:[%s1025_s1 + $0x98] sm:$0xff]  ;;  %v132_v13 = vld [vmem:[%s1025_s1 + $0x90] sm:$0xff]  ;;  %v131_v14 = vld [vmem:[%s1025_s1 + $0x88] sm:$0xff] }
   0x6   :  { %182 = vmatprep.subr.mxu0 %v141_v4  ;;  %520 = vmatprep.subr.mxu1 %v141_v4  ;;  %v130_v15 = vld [vmem:[%s1025_s1 + $0x80] sm:$0xff]  ;;  %v129_v16 = vld [vmem:[%s1025_s1 + $0x78] sm:$0xff]  ;;  %v128_v17 = vld [vmem:[%s1025_s1 + $0x70] sm:$0xff] }
   0x7   :  { %183 = vmatpush1.msra.mxu0 %v140_v5  ;;  %552 = vmatpush1.msra.mxu1 %v140_v5  ;;  %v127_v18 = vld [vmem:[%s1025_s1 + $0x68] sm:$0xff]  ;;  %v126_v19 = vld [vmem:[%s1025_s1 + $0x60] sm:$0xff]  ;;  %v125_v20 = vld [vmem:[%s1025_s1 + $0x58] sm:$0xff] }
   0x8   :  { %184 = vmatprep.subr.mxu0 %v139_v6  ;;  %521 = vmatprep.subr.mxu1 %v139_v6  ;;  %v124_v21 = vld [vmem:[%s1025_s1 + $0x50] sm:$0xff]  ;;  %v123_v22 = vld [vmem:[%s1025_s1 + $0x48] sm:$0xff]  ;;  %v122_v23 = vld [vmem:[%s1025_s1 + $0x40] sm:$0xff] }
   0x9   :  { %185 = vmatpush1.msra.mxu0 %v138_v7  ;;  %553 = vmatpush1.msra.mxu1 %v138_v7  ;;  %v121_v24 = vld [vmem:[%s1025_s1 + $0x38] sm:$0xff]  ;;  %v120_v25 = vld [vmem:[%s1025_s1 + $0x30] sm:$0xff]  ;;  %v119_v26 = vld [vmem:[%s1025_s1 + $0x28] sm:$0xff] }
   0xa   :  { %186 = vmatprep.subr.mxu0 %v137_v8  ;;  %522 = vmatprep.subr.mxu1 %v137_v8  ;;  %v118_v27 = vld [vmem:[%s1025_s1 + $0x20] sm:$0xff]  ;;  %v117_v28 = vld [vmem:[%s1025_s1 + $0x18] sm:$0xff]  ;;  %v116_v29 = vld [vmem:[%s1025_s1 + $0x10] sm:$0xff] }
   0xb   :  { %187 = vmatpush1.msra.mxu0 %v136_v9  ;;  %554 = vmatpush1.msra.mxu1 %v136_v9  ;;  %v115_v30 = vld [vmem:[%s1025_s1 + $0x8] sm:$0xff]  ;;  %v114_v31 = vld [vmem:[%s1025_s1] sm:$0xff]  ;;  %v177_v32 = vld [vmem:[%s1025_s1 + $0x1f8] sm:$0xff] }
   0xc   :  { %188 = vmatprep.subr.mxu0 %v135_v10  ;;  %523 = vmatprep.subr.mxu1 %v135_v10  ;;  %v176_v33 = vld [vmem:[%s1025_s1 + $0x1f0] sm:$0xff]  ;;  %v175_v34 = vld [vmem:[%s1025_s1 + $0x1e8] sm:$0xff]  ;;  %v174_v35 = vld [vmem:[%s1025_s1 + $0x1e0] sm:$0xff] }
   0xd   :  { %189 = vmatpush1.msra.mxu0 %v134_v11  ;;  %555 = vmatpush1.msra.mxu1 %v134_v11  ;;  %v173_v36 = vld [vmem:[%s1025_s1 + $0x1d8] sm:$0xff]  ;;  %v172_v37 = vld [vmem:[%s1025_s1 + $0x1d0] sm:$0xff]  ;;  %v171_v38 = vld [vmem:[%s1025_s1 + $0x1c8] sm:$0xff] }
   0xe   :  { %190 = vmatprep.subr.mxu0 %v133_v12  ;;  %524 = vmatprep.subr.mxu1 %v133_v12  ;;  %v170_v39 = vld [vmem:[%s1025_s1 + $0x1c0] sm:$0xff]  ;;  %v169_v40 = vld [vmem:[%s1025_s1 + $0x1b8] sm:$0xff]  ;;  %v168_v41 = vld [vmem:[%s1025_s1 + $0x1b0] sm:$0xff] }
   0xf   :  { %191 = vmatpush1.msra.mxu0 %v132_v13  ;;  %556 = vmatpush1.msra.mxu1 %v132_v13  ;;  %v167_v42 = vld [vmem:[%s1025_s1 + $0x1a8] sm:$0xff]  ;;  %v166_v43 = vld [vmem:[%s1025_s1 + $0x1a0] sm:$0xff]  ;;  %v165_v44 = vld [vmem:[%s1025_s1 + $0x198] sm:$0xff] }
  0x10   :  { %192 = vmatprep.subr.mxu0 %v131_v14  ;;  %525 = vmatprep.subr.mxu1 %v131_v14  ;;  %v164_v45 = vld [vmem:[%s1025_s1 + $0x190] sm:$0xff]  ;;  %v163_v46 = vld [vmem:[%s1025_s1 + $0x188] sm:$0xff]  ;;  %v162_v47 = vld [vmem:[%s1025_s1 + $0x180] sm:$0xff] }
  0x11   :  { %193 = vmatpush1.msra.mxu0 %v130_v15  ;;  %557 = vmatpush1.msra.mxu1 %v130_v15  ;;  %v161_v48 = vld [vmem:[%s1025_s1 + $0x178] sm:$0xff]  ;;  %v160_v49 = vld [vmem:[%s1025_s1 + $0x170] sm:$0xff]  ;;  %v159_v50 = vld [vmem:[%s1025_s1 + $0x168] sm:$0xff] }
  0x12   :  { %194 = vmatprep.subr.mxu0 %v129_v16  ;;  %526 = vmatprep.subr.mxu1 %v129_v16  ;;  %v158_v51 = vld [vmem:[%s1025_s1 + $0x160] sm:$0xff]  ;;  %v157_v52 = vld [vmem:[%s1025_s1 + $0x158] sm:$0xff]  ;;  %v156_v53 = vld [vmem:[%s1025_s1 + $0x150] sm:$0xff] }
  0x13   :  { %195 = vmatpush1.msra.mxu0 %v128_v17  ;;  %558 = vmatpush1.msra.mxu1 %v128_v17  ;;  %v155_v54 = vld [vmem:[%s1025_s1 + $0x148] sm:$0xff]  ;;  %v154_v55 = vld [vmem:[%s1025_s1 + $0x140] sm:$0xff]  ;;  %v153_v56 = vld [vmem:[%s1025_s1 + $0x138] sm:$0xff] }
  0x14   :  { %196 = vmatprep.subr.mxu0 %v127_v18  ;;  %527 = vmatprep.subr.mxu1 %v127_v18  ;;  %v152_v57 = vld [vmem:[%s1025_s1 + $0x130] sm:$0xff]  ;;  %v151_v58 = vld [vmem:[%s1025_s1 + $0x128] sm:$0xff]  ;;  %v150_v59 = vld [vmem:[%s1025_s1 + $0x120] sm:$0xff] }
  0x15   :  { %197 = vmatpush1.msra.mxu0 %v126_v19  ;;  %559 = vmatpush1.msra.mxu1 %v126_v19  ;;  %v149_v60 = vld [vmem:[%s1025_s1 + $0x118] sm:$0xff]  ;;  %v148_v61 = vld [vmem:[%s1025_s1 + $0x110] sm:$0xff]  ;;  %v147_v62 = vld [vmem:[%s1025_s1 + $0x108] sm:$0xff] }
  0x16   :  { %198 = vmatprep.subr.mxu0 %v125_v20  ;;  %528 = vmatprep.subr.mxu1 %v125_v20  ;;  %v146_v63 = vld [vmem:[%s1025_s1 + $0x100] sm:$0xff]  ;;  %v83_v0 = vld [vmem:[%s1026_s0 + $0x8] sm:$0xff]  ;;  %v85_v4 = vld [vmem:[%s1026_s0 + $0x18] sm:$0xff] }
  0x17   :  { %199 = vmatpush1.msra.mxu0 %v124_v21  ;;  %560 = vmatpush1.msra.mxu1 %v124_v21  ;;  %v99_v1 = vld [vmem:[%s1026_s0 + $0x88] sm:$0xff]  ;;  %v82_v2 = vld [vmem:[%s1026_s0] sm:$0xff]  ;;  %v101_v5 = vld [vmem:[%s1026_s0 + $0x98] sm:$0xff] }
  0x18   :  { %200 = vmatprep.subr.mxu0 %v123_v22  ;;  %529 = vmatprep.subr.mxu1 %v123_v22  ;;  %v98_v3 = vld [vmem:[%s1026_s0 + $0x80] sm:$0xff]  ;;  %v84_v6 = vld [vmem:[%s1026_s0 + $0x10] sm:$0xff]  ;;  %v87_v8 = vld [vmem:[%s1026_s0 + $0x28] sm:$0xff] }
  0x19   :  { %201 = vmatpush1.msra.mxu0 %v122_v23  ;;  %561 = vmatpush1.msra.mxu1 %v122_v23  ;;  %v100_v7 = vld [vmem:[%s1026_s0 + $0x90] sm:$0xff]  ;;  %v103_v9 = vld [vmem:[%s1026_s0 + $0xa8] sm:$0xff]  ;;  %v86_v10 = vld [vmem:[%s1026_s0 + $0x20] sm:$0xff] }
  0x1a   :  { %202 = vmatprep.subr.mxu0 %v121_v24  ;;  %530 = vmatprep.subr.mxu1 %v121_v24  ;;  %v102_v11 = vld [vmem:[%s1026_s0 + $0xa0] sm:$0xff]  ;;  %v89_v12 = vld [vmem:[%s1026_s0 + $0x38] sm:$0xff]  ;;  %v88_v14 = vld [vmem:[%s1026_s0 + $0x30] sm:$0xff] }
  0x1b   :  { %203 = vmatpush1.msra.mxu0 %v120_v25  ;;  %562 = vmatpush1.msra.mxu1 %v120_v25  ;;  %v105_v13 = vld [vmem:[%s1026_s0 + $0xb8] sm:$0xff]  ;;  %v104_v15 = vld [vmem:[%s1026_s0 + $0xb0] sm:$0xff]  ;;  %v91_v16 = vld [vmem:[%s1026_s0 + $0x48] sm:$0xff] }
  0x1c   :  { %204 = vmatprep.subr.mxu0 %v119_v26  ;;  %531 = vmatprep.subr.mxu1 %v119_v26  ;;  %v107_v17 = vld [vmem:[%s1026_s0 + $0xc8] sm:$0xff]  ;;  %v90_v18 = vld [vmem:[%s1026_s0 + $0x40] sm:$0xff]  ;;  %v93_v20 = vld [vmem:[%s1026_s0 + $0x58] sm:$0xff] }
  0x1d   :  { %205 = vmatpush1.msra.mxu0 %v118_v27  ;;  %563 = vmatpush1.msra.mxu1 %v118_v27  ;;  %v106_v19 = vld [vmem:[%s1026_s0 + $0xc0] sm:$0xff]  ;;  %v109_v21 = vld [vmem:[%s1026_s0 + $0xd8] sm:$0xff]  ;;  %v92_v22 = vld [vmem:[%s1026_s0 + $0x50] sm:$0xff] }
  0x1e   :  { %206 = vmatprep.subr.mxu0 %v117_v28  ;;  %532 = vmatprep.subr.mxu1 %v117_v28  ;;  %v108_v23 = vld [vmem:[%s1026_s0 + $0xd0] sm:$0xff]  ;;  %v95_v24 = vld [vmem:[%s1026_s0 + $0x68] sm:$0xff]  ;;  %v94_v26 = vld [vmem:[%s1026_s0 + $0x60] sm:$0xff] }
  0x1f   :  { %207 = vmatpush1.msra.mxu0 %v116_v29  ;;  %564 = vmatpush1.msra.mxu1 %v116_v29  ;;  %v111_v25 = vld [vmem:[%s1026_s0 + $0xe8] sm:$0xff]  ;;  %v110_v27 = vld [vmem:[%s1026_s0 + $0xe0] sm:$0xff]  ;;  %v97_v28 = vld [vmem:[%s1026_s0 + $0x78] sm:$0xff] }
  0x20   :  { %208 = vmatprep.subr.mxu0 %v115_v30  ;;  %533 = vmatprep.subr.mxu1 %v115_v30  ;;  %v113_v29 = vld [vmem:[%s1026_s0 + $0xf8] sm:$0xff]  ;;  %v96_v30 = vld [vmem:[%s1026_s0 + $0x70] sm:$0xff] }
  0x21   :  { %209 = vmatpush1.msra.mxu0 %v114_v31  ;;  %565 = vmatpush1.msra.mxu1 %v114_v31  ;;  %v112_v31 = vld [vmem:[%s1026_s0 + $0xf0] sm:$0xff] }
  0x22   :  { %210 = vmatprep.subr.mxu0 %v177_v32  ;;  %534 = vmatprep.subr.mxu1 %v177_v32  ;;  %v440_v32 = vlaneseq }
  0x23   :  { %211 = vmatpush2.msra.mxu0 %v176_v33  ;;  %566 = vmatpush2.msra.mxu1 %v176_v33 }
  0x24   :  { %212 = vmatprep.subr.mxu0 %v175_v34  ;;  %535 = vmatprep.subr.mxu1 %v175_v34  ;;  %v441_v33 = vshrl.u32 %v440_v32, 7 }
  0x25   :  { %213 = vmatpush2.msra.mxu0 %v174_v35  ;;  %567 = vmatpush2.msra.mxu1 %v174_v35  ;;  %v438_v35 = vld [vmem:[%s1027_s2] sm:$0x3] }
  0x26   :  { %214 = vmatprep.subr.mxu0 %v173_v36  ;;  %536 = vmatprep.subr.mxu1 %v173_v36  ;;  %v442_v34 = vsub.s32 0, %v441_v33  ;;  %v446_v36 = vsub.s32 1, %v441_v33 }
  0x27   :  { %215 = vmatpush2.msra.mxu0 %v172_v37  ;;  %568 = vmatpush2.msra.mxu1 %v172_v37 }
  0x28   :  { %216 = vmatprep.subr.mxu0 %v171_v38  ;;  %537 = vmatprep.subr.mxu1 %v171_v38  ;;  %v893_v37 = vrot.slane %v438_v35, %v442_v34  ;;  %v895_v38 = vrot.slane %v438_v35, %v446_v36 }
  0x29   :  { %217 = vmatpush2.msra.mxu0 %v170_v39  ;;  %569 = vmatpush2.msra.mxu1 %v170_v39 }
  0x2a   :  { %218 = vmatprep.subr.mxu0 %v169_v40  ;;  %538 = vmatprep.subr.mxu1 %v169_v40 }
  0x2b   :  { %219 = vmatpush2.msra.mxu0 %v168_v41  ;;  %570 = vmatpush2.msra.mxu1 %v168_v41 }
  0x2c   :  { %220 = vmatprep.subr.mxu0 %v167_v42  ;;  %539 = vmatprep.subr.mxu1 %v167_v42 }
  0x2d   :  { %221 = vmatpush2.msra.mxu0 %v166_v43  ;;  %571 = vmatpush2.msra.mxu1 %v166_v43 }
  0x2e   :  { %222 = vmatprep.subr.mxu0 %v165_v44  ;;  %540 = vmatprep.subr.mxu1 %v165_v44 }
  0x2f   :  { %223 = vmatpush2.msra.mxu0 %v164_v45  ;;  %572 = vmatpush2.msra.mxu1 %v164_v45 }
  0x30   :  { %224 = vmatprep.subr.mxu0 %v163_v46  ;;  %541 = vmatprep.subr.mxu1 %v163_v46 }
  0x31   :  { %225 = vmatpush2.msra.mxu0 %v162_v47  ;;  %573 = vmatpush2.msra.mxu1 %v162_v47 }
  0x32   :  { %226 = vmatprep.subr.mxu0 %v161_v48  ;;  %542 = vmatprep.subr.mxu1 %v161_v48 }
  0x33   :  { %227 = vmatpush2.msra.mxu0 %v160_v49  ;;  %574 = vmatpush2.msra.mxu1 %v160_v49 }
  0x34   :  { %228 = vmatprep.subr.mxu0 %v159_v50  ;;  %543 = vmatprep.subr.mxu1 %v159_v50 }
  0x35   :  { %229 = vmatpush2.msra.mxu0 %v158_v51  ;;  %575 = vmatpush2.msra.mxu1 %v158_v51 }
  0x36   :  { %230 = vmatprep.subr.mxu0 %v157_v52  ;;  %544 = vmatprep.subr.mxu1 %v157_v52 }
  0x37   :  { %231 = vmatpush2.msra.mxu0 %v156_v53  ;;  %576 = vmatpush2.msra.mxu1 %v156_v53 }
  0x38   :  { %232 = vmatprep.subr.mxu0 %v155_v54  ;;  %545 = vmatprep.subr.mxu1 %v155_v54 }
  0x39   :  { %233 = vmatpush2.msra.mxu0 %v154_v55  ;;  %577 = vmatpush2.msra.mxu1 %v154_v55 }
  0x3a   :  { %234 = vmatprep.subr.mxu0 %v153_v56  ;;  %546 = vmatprep.subr.mxu1 %v153_v56 }
  0x3b   :  { %235 = vmatpush2.msra.mxu0 %v152_v57  ;;  %578 = vmatpush2.msra.mxu1 %v152_v57 }
  0x3c   :  { %236 = vmatprep.subr.mxu0 %v151_v58  ;;  %547 = vmatprep.subr.mxu1 %v151_v58 }
  0x3d   :  { %237 = vmatpush2.msra.mxu0 %v150_v59  ;;  %579 = vmatpush2.msra.mxu1 %v150_v59 }
  0x3e   :  { %238 = vmatprep.subr.mxu0 %v149_v60  ;;  %548 = vmatprep.subr.mxu1 %v149_v60 }
  0x3f   :  { %239 = vmatpush2.msra.mxu0 %v148_v61  ;;  %580 = vmatpush2.msra.mxu1 %v148_v61 }
  0x40   :  { %240 = vmatprep.subr.mxu0 %v147_v62  ;;  %549 = vmatprep.subr.mxu1 %v147_v62 }
  0x41   :  { %241 = vmatpush2.msra.mxu0 %v146_v63  ;;  %581 = vmatpush2.msra.mxu1 %v146_v63 }
  0x42   :  { %242 = vmatprep.mubr.f32.mxu0 %v83_v0  ;;  %290 = vmatprep.mubr.f32.mxu1 %v99_v1 }
  0x43   :  { %243 = vmatmul.mubr.f32.vlgmr.msra.gmra.mxu0 %v82_v2  ;;  %291 = vmatmul.mubr.f32.vlgmr.msra.gmra.mxu1 %v98_v3 }
  0x44   :  { %248 = vmatprep.mubr.f32.mxu0 %v85_v4  ;;  %296 = vmatprep.mubr.f32.mxu1 %v101_v5 }
  0x47   :  { %249 = vmatmul.mubr.f32.gmra.mxu0 %v84_v6  ;;  %297 = vmatmul.mubr.f32.gmra.mxu1 %v100_v7 }
  0x48   :  { %254 = vmatprep.mubr.f32.mxu0 %v87_v8  ;;  %302 = vmatprep.mubr.f32.mxu1 %v103_v9 }
  0x4b   :  { %255 = vmatmul.mubr.f32.gmra.mxu0 %v86_v10  ;;  %303 = vmatmul.mubr.f32.gmra.mxu1 %v102_v11 }
  0x4c   :  { %260 = vmatprep.mubr.f32.mxu0 %v89_v12  ;;  %308 = vmatprep.mubr.f32.mxu1 %v105_v13 }
  0x4f   :  { %261 = vmatmul.mubr.f32.gmra.mxu0 %v88_v14  ;;  %309 = vmatmul.mubr.f32.gmra.mxu1 %v104_v15 }
  0x50   :  { %266 = vmatprep.mubr.f32.mxu0 %v91_v16  ;;  %314 = vmatprep.mubr.f32.mxu1 %v107_v17 }
  0x53   :  { %267 = vmatmul.mubr.f32.gmra.mxu0 %v90_v18  ;;  %315 = vmatmul.mubr.f32.gmra.mxu1 %v106_v19 }
  0x54   :  { %272 = vmatprep.mubr.f32.mxu0 %v93_v20  ;;  %320 = vmatprep.mubr.f32.mxu1 %v109_v21 }
  0x57   :  { %273 = vmatmul.mubr.f32.gmra.mxu0 %v92_v22  ;;  %321 = vmatmul.mubr.f32.gmra.mxu1 %v108_v23 }
  0x58   :  { %278 = vmatprep.mubr.f32.mxu0 %v95_v24  ;;  %326 = vmatprep.mubr.f32.mxu1 %v111_v25 }
  0x5b   :  { %279 = vmatmul.mubr.f32.gmra.mxu0 %v94_v26  ;;  %327 = vmatmul.mubr.f32.gmra.mxu1 %v110_v27 }
  0x5c   :  { %284 = vmatprep.mubr.f32.mxu0 %v97_v28  ;;  %332 = vmatprep.mubr.f32.mxu1 %v113_v29 }
  0x5f   :  { %285 = vmatmul.mubr.f32.gmra.mxu0 %v96_v30  ;;  %333 = vmatmul.mubr.f32.gmra.mxu1 %v112_v31 }
 0x103   :  { %v244_v39 = vpop.f32.mrf.mxu0  ;;  %v292_v40 = vpop.f32.mrf.mxu1 }
 0x104   :  { %v450_v41 = vadd.f32 %v893_v37, %v244_v39  ;;  %v466_v42 = vadd.f32 %v893_v37, %v292_v40 }
 0x105   :  { %v246_v43 = vpop.f32.mrf.mxu0  ;;  %v294_v44 = vpop.f32.mrf.mxu1 }
 0x106   :  { %482 = vst [vmem:[%s1028_s3] sm:$0xff] %v450_v41  ;;  %498 = vst [vmem:[%s1028_s3 + $0x80] sm:$0xff] %v466_v42  ;;  %v451_v45 = vadd.f32 %v895_v38, %v246_v43  ;;  %v467_v46 = vadd.f32 %v895_v38, %v294_v44 }
 0x107   :  { %v250_v47 = vpop.f32.mrf.mxu0  ;;  %v298_v48 = vpop.f32.mrf.mxu1 }
 0x108   :  { %483 = vst [vmem:[%s1028_s3 + $0x8] sm:$0xff] %v451_v45  ;;  %499 = vst [vmem:[%s1028_s3 + $0x88] sm:$0xff] %v467_v46  ;;  %v452_v49 = vadd.f32 %v893_v37, %v250_v47  ;;  %v468_v50 = vadd.f32 %v893_v37, %v298_v48 }
 0x109   :  { %v252_v51 = vpop.f32.mrf.mxu0  ;;  %v300_v52 = vpop.f32.mrf.mxu1 }
 0x10a   :  { %484 = vst [vmem:[%s1028_s3 + $0x10] sm:$0xff] %v452_v49  ;;  %500 = vst [vmem:[%s1028_s3 + $0x90] sm:$0xff] %v468_v50  ;;  %v453_v53 = vadd.f32 %v895_v38, %v252_v51  ;;  %v469_v54 = vadd.f32 %v895_v38, %v300_v52 }
 0x10b   :  { %v256_v55 = vpop.f32.mrf.mxu0  ;;  %v304_v56 = vpop.f32.mrf.mxu1 }
 0x10c   :  { %485 = vst [vmem:[%s1028_s3 + $0x18] sm:$0xff] %v453_v53  ;;  %501 = vst [vmem:[%s1028_s3 + $0x98] sm:$0xff] %v469_v54  ;;  %v454_v57 = vadd.f32 %v893_v37, %v256_v55  ;;  %v470_v58 = vadd.f32 %v893_v37, %v304_v56 }
 0x10d   :  { %v258_v59 = vpop.f32.mrf.mxu0  ;;  %v306_v60 = vpop.f32.mrf.mxu1 }
 0x10e   :  { %486 = vst [vmem:[%s1028_s3 + $0x20] sm:$0xff] %v454_v57  ;;  %502 = vst [vmem:[%s1028_s3 + $0xa0] sm:$0xff] %v470_v58  ;;  %v455_v61 = vadd.f32 %v895_v38, %v258_v59  ;;  %v471_v62 = vadd.f32 %v895_v38, %v306_v60 }
 0x10f   :  { %v262_v63 = vpop.f32.mrf.mxu0  ;;  %v310_v0 = vpop.f32.mrf.mxu1 }
 0x110   :  { %487 = vst [vmem:[%s1028_s3 + $0x28] sm:$0xff] %v455_v61  ;;  %503 = vst [vmem:[%s1028_s3 + $0xa8] sm:$0xff] %v471_v62  ;;  %v456_v1 = vadd.f32 %v893_v37, %v262_v63  ;;  %v472_v2 = vadd.f32 %v893_v37, %v310_v0 }
 0x111   :  { %v264_v3 = vpop.f32.mrf.mxu0  ;;  %v312_v4 = vpop.f32.mrf.mxu1 }
 0x112   :  { %488 = vst [vmem:[%s1028_s3 + $0x30] sm:$0xff] %v456_v1  ;;  %504 = vst [vmem:[%s1028_s3 + $0xb0] sm:$0xff] %v472_v2  ;;  %v457_v5 = vadd.f32 %v895_v38, %v264_v3  ;;  %v473_v6 = vadd.f32 %v895_v38, %v312_v4 }
 0x113   :  { %v268_v7 = vpop.f32.mrf.mxu0  ;;  %v316_v8 = vpop.f32.mrf.mxu1 }
 0x114   :  { %489 = vst [vmem:[%s1028_s3 + $0x38] sm:$0xff] %v457_v5  ;;  %505 = vst [vmem:[%s1028_s3 + $0xb8] sm:$0xff] %v473_v6  ;;  %v458_v9 = vadd.f32 %v893_v37, %v268_v7  ;;  %v474_v10 = vadd.f32 %v893_v37, %v316_v8 }
 0x115   :  { %v270_v11 = vpop.f32.mrf.mxu0  ;;  %v318_v12 = vpop.f32.mrf.mxu1 }
 0x116   :  { %490 = vst [vmem:[%s1028_s3 + $0x40] sm:$0xff] %v458_v9  ;;  %506 = vst [vmem:[%s1028_s3 + $0xc0] sm:$0xff] %v474_v10  ;;  %v459_v13 = vadd.f32 %v895_v38, %v270_v11  ;;  %v475_v14 = vadd.f32 %v895_v38, %v318_v12 }
 0x117   :  { %v274_v15 = vpop.f32.mrf.mxu0  ;;  %v322_v16 = vpop.f32.mrf.mxu1 }
 0x118   :  { %491 = vst [vmem:[%s1028_s3 + $0x48] sm:$0xff] %v459_v13  ;;  %507 = vst [vmem:[%s1028_s3 + $0xc8] sm:$0xff] %v475_v14  ;;  %v460_v17 = vadd.f32 %v893_v37, %v274_v15  ;;  %v476_v18 = vadd.f32 %v893_v37, %v322_v16 }
 0x119   :  { %v276_v19 = vpop.f32.mrf.mxu0  ;;  %v324_v20 = vpop.f32.mrf.mxu1 }
 0x11a   :  { %492 = vst [vmem:[%s1028_s3 + $0x50] sm:$0xff] %v460_v17  ;;  %508 = vst [vmem:[%s1028_s3 + $0xd0] sm:$0xff] %v476_v18  ;;  %v461_v21 = vadd.f32 %v895_v38, %v276_v19  ;;  %v477_v22 = vadd.f32 %v895_v38, %v324_v20 }
 0x11b   :  { %v280_v23 = vpop.f32.mrf.mxu0  ;;  %v328_v24 = vpop.f32.mrf.mxu1 }
 0x11c   :  { %493 = vst [vmem:[%s1028_s3 + $0x58] sm:$0xff] %v461_v21  ;;  %509 = vst [vmem:[%s1028_s3 + $0xd8] sm:$0xff] %v477_v22  ;;  %v462_v25 = vadd.f32 %v893_v37, %v280_v23  ;;  %v478_v26 = vadd.f32 %v893_v37, %v328_v24 }
 0x11d   :  { %v282_v27 = vpop.f32.mrf.mxu0  ;;  %v330_v28 = vpop.f32.mrf.mxu1 }
 0x11e   :  { %494 = vst [vmem:[%s1028_s3 + $0x60] sm:$0xff] %v462_v25  ;;  %510 = vst [vmem:[%s1028_s3 + $0xe0] sm:$0xff] %v478_v26  ;;  %v463_v29 = vadd.f32 %v895_v38, %v282_v27  ;;  %v479_v30 = vadd.f32 %v895_v38, %v330_v28 }
 0x11f   :  { %v286_v31 = vpop.f32.mrf.mxu0  ;;  %v334_v32 = vpop.f32.mrf.mxu1 }
 0x120   :  { %495 = vst [vmem:[%s1028_s3 + $0x68] sm:$0xff] %v463_v29  ;;  %511 = vst [vmem:[%s1028_s3 + $0xe8] sm:$0xff] %v479_v30  ;;  %v464_v33 = vadd.f32 %v893_v37, %v286_v31  ;;  %v480_v34 = vadd.f32 %v893_v37, %v334_v32 }
 0x121   :  { %v288_v35 = vpop.f32.mrf.mxu0  ;;  %v336_v36 = vpop.f32.mrf.mxu1 }
 0x122   :  { %496 = vst [vmem:[%s1028_s3 + $0x70] sm:$0xff] %v464_v33  ;;  %512 = vst [vmem:[%s1028_s3 + $0xf0] sm:$0xff] %v480_v34  ;;  %v465_v39 = vadd.f32 %v895_v38, %v288_v35  ;;  %v481_v40 = vadd.f32 %v895_v38, %v336_v36 }
 0x124   :  { %497 = vst [vmem:[%s1028_s3 + $0x78] sm:$0xff] %v465_v39  ;;  %513 = vst [vmem:[%s1028_s3 + $0xf8] sm:$0xff] %v481_v40 }

</bundles_post_ra>
